<compile_context>
chip_gen: v6e
topology: v6e:2x2x1
jax: 0.10.0
libtpu: 0.0.40
codegen_flags: <defaults>
</compile_context>

<pallas_src>
import functools
import math
from typing import NamedTuple

import jax
import jax.numpy as jnp
from jax.experimental import pallas as pl
from jax.experimental.pallas import tpu as pltpu

LANE = 128
SUBLANE = 8


def _round_up(n, m):
    return ((n + m - 1) // m) * m


def _gelu_exact(x):
    # PyTorch nn.GELU default is the exact (erf) formulation.
    return 0.5 * x * (1.0 + jax.lax.erf(x * (1.0 / math.sqrt(2.0))))


class GateNetParams(NamedTuple):
    w1p: jax.Array      # (Hs, D_in)    PyTorch [out, in] layout, sublane-padded
    w2p: jax.Array      # (Os, Hs)
    bp: jax.Array       # (Hs + Os, 1)  packed bias column: rows [0:H)=b1, [Hs:Hs+O)=b2
    num_outputs: int


def prepare_params(w1, b1, w2, b2):
    """Pad the (tiny) GateNet parameters once, outside the per-step hot path.

    w1: [H, D_in], b1: [H], w2: [O, H], b2: [O]   (native PyTorch nn.Linear layout).
    """
    H, Din = w1.shape
    O = w2.shape[0]
    Hs = _round_up(H, SUBLANE)
    Os = _round_up(O, SUBLANE)
    w1p = jnp.zeros((Hs, Din), jnp.float32).at[:H, :].set(w1.astype(jnp.float32))
    w2p = jnp.zeros((Os, Hs), jnp.float32).at[:O, :H].set(w2.astype(jnp.float32))
    bp = jnp.zeros((Hs + Os, 1), jnp.float32)
    bp = bp.at[:H, 0].set(b1.astype(jnp.float32))
    bp = bp.at[Hs:Hs + O, 0].set(b2.astype(jnp.float32))
    return GateNetParams(w1p, w2p, bp, O)


def _gatenet_kernel(x_ref, w1_ref, w2_ref, b_ref, out_ref, *, hs):
    # x_ref: (TB, D_in)   w1_ref: (Hs, D_in)   w2_ref: (Os, Hs)   b_ref: (Hs+Os, 1)
    b1 = b_ref[0:hs, :]          # (Hs, 1) -> lane-broadcast over the batch axis
    b2 = b_ref[hs:, :]           # (Os, 1)

    # Layer 1 on the MXU: h^T = W1 @ x^T, contracting D_in (last dim) of BOTH
    # operands — the standard q @ k^T dimension-number pattern.  f32 accumulation.
    h = jax.lax.dot_general(
        w1_ref[...], x_ref[...],
        dimension_numbers=(((1,), (1,)), ((), ())),
        preferred_element_type=jnp.float32)                          # (Hs, TB)

    # Exact erf GELU over only Hs sublanes x TB lanes; gelu(0) = 0 keeps the
    # zero-padded hidden rows at 0, so the padding stays exact.
    h = _gelu_exact(h + b1)
    # TODO(synk): dropout_p > 0.0 (training mode) would need pltpu.prng_random_bits;
    # the default GateNet config uses dropout_p = 0.0 so it is the identity here.

    # Layer 2: out^T = W2 @ h^T.
    o = jnp.dot(w2_ref[...], h, preferred_element_type=jnp.float32)  # (Os, TB)
    out_ref[...] = (o + b2).astype(out_ref.dtype)


def gatenet_forward(x, params: GateNetParams, *, block_b=2048, target_tiles=4):
    """x: [B, D_in] -> logits [B, num_outputs]."""
    B, Din = x.shape
    w1p, w2p, bp, O = params
    Hs = w1p.shape[0]
    Os = w2p.shape[0]
    assert w1p.shape[1] == Din, "input_dim mismatch between x and w1"

    # Batch tile lives on the lane axis of the intermediate/output tiles, so it must
    # be a multiple of 128.  Aim for >= target_tiles grid steps (so both v7x
    # TensorCores get work and DMA/compute pipelining has something to overlap),
    # capped at block_b (x tile 256 KB + out tile 64 KB at TB=2048, double-buffered
    # well under 1 MB -> fine on v5e/v6e/v7x and under the scoped-VMEM default).
    TB = min(_round_up(block_b, LANE),
             _round_up(pl.cdiv(B, max(target_tiles, 1)), LANE))
    TB = max(TB, LANE)
    grid_len = pl.cdiv(B, TB)
    Bp = grid_len * TB        # only the (tiny) output is allocated padded; x is not copied

    kernel = functools.partial(_gatenet_kernel, hs=Hs)

    flops = 2 * B * (Din * Hs + Hs * Os)
    transcendentals = Bp * Hs                                  # actual erf count
    bytes_accessed = 4 * (B * Din + w1p.size + w2p.size + bp.size + Os * Bp)

    out_t = pl.pallas_call(
        kernel,
        out_shape=jax.ShapeDtypeStruct((Os, Bp), x.dtype),
        grid=(grid_len,),
        in_specs=[
            pl.BlockSpec((TB, Din), lambda i: (i, 0)),         # streamed batch tiles
            pl.BlockSpec((Hs, Din), lambda i: (0, 0)),         # resident W1 (no re-DMA)
            pl.BlockSpec((Os, Hs), lambda i: (0, 0)),          # resident W2
            pl.BlockSpec((Hs + Os, 1), lambda i: (0, 0)),      # packed bias column
        ],
        out_specs=pl.BlockSpec((Os, TB), lambda i: (0, i)),    # lane-dense out^T tiles
        compiler_params=pltpu.CompilerParams(
            dimension_semantics=("parallel",)),                # megacore split on v7x
        cost_estimate=pl.CostEstimate(
            flops=flops, transcendentals=transcendentals,
            bytes_accessed=bytes_accessed),
    )(x, w1p, w2p, bp)

    # (Os, Bp) -> [B, O]; this final transpose/slice touches only O*B*4 bytes.
    return out_t[:O, :B].T


def xavier_uniform(key, fan_out, fan_in, dtype=jnp.float32):
    # Matches torch.nn.init.xavier_uniform_ on a [out, in] weight matrix.
    bound = math.sqrt(6.0 / (fan_in + fan_out))
    return jax.random.uniform(key, (fan_out, fan_in), dtype=dtype,
                              minval=-bound, maxval=bound)


def reference_forward(x, w1, b1, w2, b2):
    # PyTorch-layout weights: w1 [H, D_in], w2 [O, H].
    h = _gelu_exact(x @ w1.T + b1)
    return h @ w2.T + b2


if __name__ == "__main__":
    # GateNet(input_dim=32, num_outputs=8, num_layers=2) ->
    # hidden_dim = max(32 // 2, 8) = 16
    batch = 256
    input_dim = 32
    num_outputs = 8
    hidden_dim = max(input_dim // 2, num_outputs)    # 16

    key = jax.random.PRNGKey(0)
    kx, k1, k2 = jax.random.split(key, 3)

    x = jax.random.normal(kx, (batch, input_dim), dtype=jnp.float32)

    # PyTorch nn.Linear weights are [out, in]; used as-is (no transposes needed).
    w1 = xavier_uniform(k1, hidden_dim, input_dim)     # [H, D_in]
    w2 = xavier_uniform(k2, num_outputs, hidden_dim)   # [O, H]
    b1 = jnp.zeros((hidden_dim,), jnp.float32)
    b2 = jnp.zeros((num_outputs,), jnp.float32)

    params = prepare_params(w1, b1, w2, b2)            # padded once, outside the hot path

    # target_tiles=4 with batch=256 gives TB=128 -> a grid of 2 batch tiles
    # (exercises the pipelined / "parallel" grid path).
    out = gatenet_forward(x, params)
    out = jax.block_until_ready(out)

    ref = reference_forward(x, w1, b1, w2, b2)
    assert out.shape == (batch, num_outputs)
    assert jnp.allclose(out, ref, atol=1e-5, rtol=1e-5), "mismatch vs reference"

    print("KERNEL_OK")
</pallas_src>

<mosaic_0001>
module attributes {stable_mosaic.version = 11 : i64} {
  func.func @_gatenet_kernel(%arg0: i32, %arg1: memref<128x32xf32, #tpu.memory_space<vmem>>, %arg2: memref<16x32xf32, #tpu.memory_space<vmem>>, %arg3: memref<8x16xf32, #tpu.memory_space<vmem>>, %arg4: memref<24x1xf32, #tpu.memory_space<vmem>>, %arg5: memref<8x128xf32, #tpu.memory_space<vmem>>) attributes {dimension_semantics = [#tpu.dimension_semantics<parallel>], iteration_bounds = array<i64: 2>, scalar_prefetch = 0 : i64, scratch_operands = 0 : i64, tpu.core_type = #tpu.core_type<tc>, window_params = [{transform_indices = @transform_0, window_bounds = array<i64: 128, 32>}, {pipeline_mode = #tpu.pipeline_mode<synchronous>, transform_indices = @transform_1, window_bounds = array<i64: 16, 32>}, {pipeline_mode = #tpu.pipeline_mode<synchronous>, transform_indices = @transform_2, window_bounds = array<i64: 8, 16>}, {pipeline_mode = #tpu.pipeline_mode<synchronous>, transform_indices = @transform_3, window_bounds = array<i64: 24, 1>}, {transform_indices = @transform_4, window_bounds = array<i64: 8, 128>}]} {
    %c0 = arith.constant 0 : index
    %c0_0 = arith.constant 0 : index
    %0 = vector.load %arg4[%c0, %c0_0] : memref<24x1xf32, #tpu.memory_space<vmem>>, vector<16x1xf32>
    %c16 = arith.constant 16 : index
    %c0_1 = arith.constant 0 : index
    %1 = vector.load %arg4[%c16, %c0_1] : memref<24x1xf32, #tpu.memory_space<vmem>>, vector<8x1xf32>
    %c0_2 = arith.constant 0 : index
    %c0_3 = arith.constant 0 : index
    %2 = vector.load %arg2[%c0_2, %c0_3] : memref<16x32xf32, #tpu.memory_space<vmem>>, vector<16x32xf32>
    %c0_4 = arith.constant 0 : index
    %c0_5 = arith.constant 0 : index
    %3 = vector.load %arg1[%c0_4, %c0_5] : memref<128x32xf32, #tpu.memory_space<vmem>>, vector<128x32xf32>
    %cst = arith.constant dense<0.000000e+00> : vector<16x128xf32>
    %4 = tpu.matmul %2, %3, %cst {dimension_numbers = #tpu.dot_dimension_numbers<[1], [1], [0], [0], [0, 0, 1, 0], [], []>} : vector<16x32xf32>, vector<128x32xf32>, vector<16x128xf32> -> vector<16x128xf32>
    %5 = vector.broadcast %0 : vector<16x1xf32> to vector<16x128xf32>
    %6 = arith.addf %4, %5 : vector<16x128xf32>
    %cst_6 = arith.constant 5.000000e-01 : f32
    %7 = vector.broadcast %cst_6 : f32 to vector<16x128xf32>
    %8 = arith.mulf %7, %6 : vector<16x128xf32>
    %cst_7 = arith.constant 0.707106769 : f32
    %9 = vector.broadcast %cst_7 : f32 to vector<16x128xf32>
    %10 = arith.mulf %6, %9 : vector<16x128xf32>
    %11 = math.erf %10 : vector<16x128xf32>
    %cst_8 = arith.constant 1.000000e+00 : f32
    %12 = vector.broadcast %cst_8 : f32 to vector<16x128xf32>
    %13 = arith.addf %12, %11 : vector<16x128xf32>
    %14 = arith.mulf %8, %13 : vector<16x128xf32>
    %c0_9 = arith.constant 0 : index
    %c0_10 = arith.constant 0 : index
    %15 = vector.load %arg3[%c0_9, %c0_10] : memref<8x16xf32, #tpu.memory_space<vmem>>, vector<8x16xf32>
    %cst_11 = arith.constant dense<0.000000e+00> : vector<8x128xf32>
    %16 = tpu.matmul %15, %14, %cst_11 {dimension_numbers = #tpu.dot_dimension_numbers<[1], [0], [0], [1], [0, 0, 1, 1], [], []>} : vector<8x16xf32>, vector<16x128xf32>, vector<8x128xf32> -> vector<8x128xf32>
    %17 = vector.broadcast %1 : vector<8x1xf32> to vector<8x128xf32>
    %18 = arith.addf %16, %17 : vector<8x128xf32>
    %c0_12 = arith.constant 0 : index
    %c0_13 = arith.constant 0 : index
    %19 = vector.load %arg5[%c0_12, %c0_13] : memref<8x128xf32, #tpu.memory_space<vmem>>, vector<8x128xf32>
    tpu.vector_store %arg5[%c0_12, %c0_13], %18 {strides = array<i32>} : memref<8x128xf32, #tpu.memory_space<vmem>>, vector<8x128xf32>,
    return
  }
  func.func @transform_0(%arg0: i32) -> (i32, i32) {
    %c0_i32 = arith.constant 0 : i32
    %c0_i32_0 = arith.constant 0 : i32
    return %arg0, %c0_i32 : i32, i32
  }
  func.func @transform_1(%arg0: i32) -> (i32, i32) {
    %c0_i32 = arith.constant 0 : i32
    %c0_i32_0 = arith.constant 0 : i32
    %c0_i32_1 = arith.constant 0 : i32
    return %c0_i32, %c0_i32_0 : i32, i32
  }
  func.func @transform_2(%arg0: i32) -> (i32, i32) {
    %c0_i32 = arith.constant 0 : i32
    %c0_i32_0 = arith.constant 0 : i32
    %c0_i32_1 = arith.constant 0 : i32
    return %c0_i32, %c0_i32_0 : i32, i32
  }
  func.func @transform_3(%arg0: i32) -> (i32, i32) {
    %c0_i32 = arith.constant 0 : i32
    %c0_i32_0 = arith.constant 0 : i32
    %c0_i32_1 = arith.constant 0 : i32
    return %c0_i32, %c0_i32_0 : i32, i32
  }
  func.func @transform_4(%arg0: i32) -> (i32, i32) {
    %c0_i32 = arith.constant 0 : i32
    %c0_i32_0 = arith.constant 0 : i32
    return %c0_i32, %arg0 : i32, i32
  }
}

</mosaic_0001>

<bundles_post_ra>
// kernel: tpu_custom_call.1
= control target key start
LH: loop header
LB: loop body
LE: loop exit
PB: predicated region body
PF: predicated region fallthrough
CT: control target
= control target key end

     0   :  { %9 = vsyncpa [#allocation3], 0  ;;  %s917_s0 = inlined_call_operand.vmem [shape: f32[256,32], index: 0, kind: input, shape index: {}]   ;;  %s918_s1 = inlined_call_operand.vmem [shape: f32[16,32], index: 1, kind: input, shape index: {}]   ;;  %s919_s2 = inlined_call_operand.vmem [shape: f32[8,16], index: 2, kind: input, shape index: {}]   ;;  %s920_s3 = inlined_call_operand.vmem [shape: f32[24,1], index: 3, kind: input, shape index: {}]   ;;  %s921_s4 = inlined_call_operand.hbm [shape: f32[8,256], index: 4, kind: output, shape index: {}]  }
   0x1   :  { %11 = vsyncpa [#allocation3 + $0x1], 0  ;;  %s755_s15 = smov 0   ;;  %s757_s16 = smov 0  }
   0x2   :  { %s759_s17 = smov 0   ;;  %s761_s18 = smov 0  }
   0x3 LB: > { %s776_s19 = sadd.s32 4294967295, %s724_s18   ;;  %s523_s20 = sadd.s32 4294967294, %s724_s18   ;;  %s724_s18 = sphi %s761_s18, %s927_s18   ;;  %s720_s17 = sphi %s759_s17, %s926_s17   ;;  %s716_s16 = sphi %s757_s16, %s925_s16   ;;  %s712_s15 = sphi %s755_s15, %s924_s15  }
   0x4   : > { %s780_s21 = sadd.s32 1, %s724_s18   ;;  %s113_s22 = sadd.s32 1, %s720_s17 }
   0x5   : > { %s110_s23 = ssub.s32 %s724_s18, %s780_s21  ;;  %p123_p0 = scmp.ne.s32.totalorder %s720_s17, %s716_s16 }
   0x6   : > { %p111_p1 = scmp.eq.s32.totalorder %s110_s23, 0  ;;  %p124_p2 = scmp.eq.s32.totalorder %s776_s19, 1 }
   0x7   : > { %p129_p3 = scmp.ne.s32.totalorder %s716_s16, %s712_s15  ;;  %p130_p4 = scmp.eq.s32.totalorder %s523_s20, 1 }
   0x8   : > { %s791_s24 = scalar_select %p111_p1, %s720_s17, %s113_s22  }
   0x9   : > { %p793_p5 = por %p124_p2, %p123_p0  ;;  %p797_p6 = por %p130_p4, %p129_p3 }
   0xa   : > { %p526_p7 = scmp.ge.s32.totalorder %s724_s18, 1  ;;  %p166_p8 = scmp.lt.s32.totalorder %s724_s18, 3 }
   0xc   : > { %p167_p9 = pnand %p526_p7, %p166_p8 }
   0xd   : > { %s528_s27 = sshll.u32 (!%p167_p9), %s776_s19, 4  ;;  %s550_s29 = sshll.u32 (!%p167_p9), %s776_s19, 7 }
   0xe   : > { %170 = sbr.rel (%p167_p9) target bundleno = 513 (0x201), region = 36  ;;  %p193_p10 = scmp.lt.s32.totalorder (!%p167_p9), %s528_s27, 31 }
  0x13   : > { %vm229_vm0 = vcmask 261120   ;;  %v201_v0 = vld [vmem:[%s918_s1] sm:$0xff]  ;;  %v199_v1 = vld [vmem:[%s920_s3 + $0x8] sm:$0xff]  ;;  %v726_v2 = vmov 0   ;;  %s929_s27 = smov (!%p193_p10, %s528_s27), 31  ;;  %v727_v21 = vmov 0.0  }
  0x14   : > { %606 = vmatprep.mubr.msk.f32.mxu0 %vm229_vm0, %v201_v0  ;;  %658 = vset.pattern.permute.xlu0 %v726_v2  ;;  %v198_v3 = vld [vmem:[%s920_s3] sm:$0xff]  ;;  %s529_s8 = sshll.u32 %s929_s27, 3  ;;  %v202_v20 = vld [vmem:[%s918_s1 + $0x8] sm:$0xff]  ;;  %vm728_vm1 = vmmov 0   ;;  %v200_v22 = vld [vmem:[%s920_s3 + $0x10] sm:$0xff]  ;;  %vm375_vm2 = vcmask 130048  }
  0x15   : > { %226 = vperm.xlu0 %658, %v199_v1   ;;  %659 = vset.pattern.permute.xlu1 %v726_v2  ;;  %s817_s11 = scalar_lea.vmem %s917_s0, %s529_s8  ;;  %v369_v39 = vld [vmem:[%s919_s2] sm:$0xff]  ;;  %s189_s27 = sand.u32 1, %s716_s16  }
  0x16   : > { %v218_v4 = vld [vmem:[%s817_s11 + $0x78] sm:$0xff]  ;;  %v217_v5 = vld [vmem:[%s817_s11 + $0x70] sm:$0xff]  ;;  %v216_v6 = vld [vmem:[%s817_s11 + $0x68] sm:$0xff]  ;;  %609 = vmatprep.subr.mxu1 %v727_v21  ;;  %613 = vmatprep.mubr.msk.f32.mxu1 %vm728_vm1, %v727_v21  ;;  %s527_s28 = sshll.u32 %s189_s27, 3  ;;  %s882_s8 = scalar_lea.hbm %s921_s4, %s550_s29 }
  0x17   : > { %574 = vmatprep.subr.msk.mxu0 %vm229_vm0, %v218_v4  ;;  %v215_v7 = vld [vmem:[%s817_s11 + $0x60] sm:$0xff]  ;;  %v214_v8 = vld [vmem:[%s817_s11 + $0x58] sm:$0xff]  ;;  %v213_v9 = vld [vmem:[%s817_s11 + $0x50] sm:$0xff]  ;;  %372 = vperm.xlu1 %659, %v200_v22   ;;  %s191_s30 = scalar_lea.vmem [#allocation2], %s527_s28  ;;  %s451_s9 = scalar_lea.sflag [#allocation3], %s189_s27 }
  0x18   : > { %575 = vmatpush3.xpose.msk.msra.mxu0 %vm229_vm0, %v218_v4  ;;  %v212_v10 = vld [vmem:[%s817_s11 + $0x48] sm:$0xff]  ;;  %v211_v11 = vld [vmem:[%s817_s11 + $0x40] sm:$0xff]  ;;  %v210_v12 = vld [vmem:[%s817_s11 + $0x38] sm:$0xff]  ;;  %s464_s5 = sshll.u32 %s191_s30, 4  ;;  %s465_s5 = int_to_ptr.vmem [resolvable:$true] %s464_s5 }
  0x19   : > { %221 = vperm.xlu0 %658, %v198_v3   ;;  %576 = vmatprep.subr.msk.mxu0 %vm229_vm0, %v217_v5  ;;  %v209_v13 = vld [vmem:[%s817_s11 + $0x30] sm:$0xff]  ;;  %v208_v14 = vld [vmem:[%s817_s11 + $0x28] sm:$0xff]  ;;  %v207_v15 = vld [vmem:[%s817_s11 + $0x20] sm:$0xff]  ;;  %s664_s10 = scalar_lea.vmem %s465_s5, 128 }
  0x1a   : > { %v206_v16 = vld [vmem:[%s817_s11 + $0x18] sm:$0xff]  ;;  %v205_v17 = vld [vmem:[%s817_s11 + $0x10] sm:$0xff]  ;;  %v204_v18 = vld [vmem:[%s817_s11 + $0x8] sm:$0xff]  ;;  %p665_p11 = scmp.ne.s32.totalorder %s465_s5, %s664_s10 }
  0x1b   : > { %v203_v19 = vld [vmem:[%s817_s11] sm:$0xff]  ;;  %s729_s11 = smov [#allocation2]  }
  0x1c   : > { %577 = vmatpush3.xpose.msk.msra.mxu0 %vm229_vm0, %v217_v5  ;;  %p666_p12 = pnand %p665_p11, %p793_p5  ;;  %s668_s19 = sshll.u32 %s729_s11, 4  ;;  %s669_s19 = int_to_ptr.vmem [resolvable:$false] %s668_s19 }
  0x1d   : > { %578 = vmatprep.subr.msk.mxu0 %vm229_vm0, %v216_v6  ;;  %s670_s12 = scalar_lea.vmem %s669_s19, 256  ;;  %p671_p0 = scmp.lt.s32.totalorder %s465_s5, %s669_s19 }
  0x1e   : > { %p667_p13 = pneg %p666_p12  ;;  %p672_p1 = scmp.lt.s32.totalorder %s670_s12, %s664_s10 }
  0x20   : > { %579 = vmatpush3.xpose.msk.msra.mxu0 %vm229_vm0, %v216_v6  ;;  %p673_p2 = por %p672_p1, %p671_p0 }
  0x21   : > { %580 = vmatprep.subr.msk.mxu0 %vm229_vm0, %v215_v7 }
  0x22   : > { %p674_p3 = pnand %p673_p2, %p667_p13 }
  0x24   : > { %581 = vmatpush3.xpose.msk.msra.mxu0 %vm229_vm0, %v215_v7 }
  0x25   : > { %582 = vmatprep.subr.msk.mxu0 %vm229_vm0, %v214_v8 }
  0x28   : > { %583 = vmatpush3.xpose.msk.msra.mxu0 %vm229_vm0, %v214_v8 }
  0x29   : > { %584 = vmatprep.subr.msk.mxu0 %vm229_vm0, %v213_v9 }
  0x2c   : > { %585 = vmatpush3.xpose.msk.msra.mxu0 %vm229_vm0, %v213_v9 }
  0x2d   : > { %586 = vmatprep.subr.msk.mxu0 %vm229_vm0, %v212_v10 }
  0x30   : > { %587 = vmatpush3.xpose.msk.msra.mxu0 %vm229_vm0, %v212_v10 }
  0x31   : > { %588 = vmatprep.subr.msk.mxu0 %vm229_vm0, %v211_v11 }
  0x34   : > { %589 = vmatpush3.xpose.msk.msra.mxu0 %vm229_vm0, %v211_v11 }
  0x35   : > { %590 = vmatprep.subr.msk.mxu0 %vm229_vm0, %v210_v12 }
  0x38   : > { %591 = vmatpush3.xpose.msk.msra.mxu0 %vm229_vm0, %v210_v12 }
  0x39   : > { %592 = vmatprep.subr.msk.mxu0 %vm229_vm0, %v209_v13 }
  0x3c   : > { %593 = vmatpush3.xpose.msk.msra.mxu0 %vm229_vm0, %v209_v13 }
  0x3d   : > { %594 = vmatprep.subr.msk.mxu0 %vm229_vm0, %v208_v14 }
  0x40   : > { %595 = vmatpush3.xpose.msk.msra.mxu0 %vm229_vm0, %v208_v14 }
  0x41   : > { %596 = vmatprep.subr.msk.mxu0 %vm229_vm0, %v207_v15 }
  0x44   : > { %597 = vmatpush3.xpose.msk.msra.mxu0 %vm229_vm0, %v207_v15 }
  0x45   : > { %598 = vmatprep.subr.msk.mxu0 %vm229_vm0, %v206_v16 }
  0x48   : > { %599 = vmatpush3.xpose.msk.msra.mxu0 %vm229_vm0, %v206_v16 }
  0x49   : > { %600 = vmatprep.subr.msk.mxu0 %vm229_vm0, %v205_v17 }
  0x4c   : > { %601 = vmatpush3.xpose.msk.msra.mxu0 %vm229_vm0, %v205_v17 }
  0x4d   : > { %602 = vmatprep.subr.msk.mxu0 %vm229_vm0, %v204_v18 }
  0x50   : > { %603 = vmatpush3.xpose.msk.msra.mxu0 %vm229_vm0, %v204_v18 }
  0x51   : > { %604 = vmatprep.subr.msk.mxu0 %vm229_vm0, %v203_v19 }
  0x54   : > { %605 = vmatpush3.xpose.msk.msra.mxu0 %vm229_vm0, %v203_v19 }
  0x57   : > { %607 = vmatmul.mubr.msk.f32.vlgmr.msra.gmra.mxu0 %vm229_vm0, %v202_v20 }
  0x90   : > { %v227_v23 = vpop.permute.xlu0 %226 }
  0x92   : > { %v373_v40 = vpop.permute.xlu1 %372 }
  0x94   : > { %v222_v26 = vpop.permute.xlu0 %221 }
 0x117   : > { %v608_v24 = vpop.f32.mrf.mxu0 }
 0x118   : > { %v356_v25 = vadd.f32 %v608_v24, %v227_v23 }
 0x119   : > { %v350_v27 = vpop.f32.mrf.mxu0 }
 0x11a   : > { %v362_v28 = vmul.f32 0.70710677, %v356_v25  ;;  %v351_v29 = vadd.f32 %v350_v27, %v222_v26  ;;  %v360_v32 = vmul.f32 0.5, %v356_v25 }
 0x11c   : > { %660 = verf.f32 %v362_v28  ;;  %v361_v30 = vmul.f32 0.70710677, %v351_v29  ;;  %v359_v35 = vmul.f32 0.5, %v351_v29 }
 0x11e   : > { %662 = verf.f32 %v361_v30 }
 0x129   : > { %v661_v31 = vpop.eup %660 }
 0x12a   : > { %v366_v33 = vadd.f32 1.0, %v661_v31 }
 0x12b   : > { %v663_v34 = vpop.eup %662 }
 0x12c   : > { %v368_v36 = vmul.f32 %v366_v33, %v360_v32  ;;  %v365_v37 = vadd.f32 1.0, %v663_v34 }
 0x12e   : > { %610 = vmatpush3.msra.mxu1 %v368_v36  ;;  %v367_v38 = vmul.f32 %v365_v37, %v359_v35 }
 0x12f   : > { %611 = vmatprep.subr.mxu1 %v727_v21 }
 0x130   : > { %612 = vmatpush3.msra.mxu1 %v367_v38 }
 0x131   : > { %614 = vmatmul.mubr.msk.f32.vlgmr.msra.gmra.mxu1 %vm375_vm2, %v369_v39 }
 0x1f1   : > { %v445_v41 = vpop.f32.mrf.mxu1 }
 0x1f2   : > { %v446_v42 = vadd.f32 %v445_v41, %v373_v40 }
 0x1f3   : > { %v615_v43 = vpop.f32.mrf.mxu1 }
 0x1f4   : > { %449 = vst [vmem:[%s191_s30] sm:$0xff] %v446_v42 }
 0x1f5   : > { %677 = shalt.err (!%p674_p3)
}
 0x1f6   : > { %s678_s13 = scalar_lea.hbm %s882_s8, 128  ;;  %s682_s22 = scalar_lea.hbm %s921_s4, 256 }
 0x1f7   : > { %p679_p4 = scmp.ne.s32.totalorder %s882_s8, %s678_s13  ;;  %p683_p9 = scmp.lt.s32.totalorder %s882_s8, %s921_s4 }
 0x1f8   : > { %p684_p10 = scmp.lt.s32.totalorder %s682_s22, %s678_s13 }
 0x1f9   : > { %p680_p7 = pnand %p679_p4, %p793_p5 }
 0x1fa   : > { %p685_p11 = por %p684_p10, %p683_p9 }
 0x1fb   : > { %p681_p8 = pneg %p680_p7 }
 0x1fd   : > { %p686_p12 = pnand %p685_p11, %p681_p8 }
 0x1ff   : > { %689 = shalt.err (!%p686_p12)
}
 0x200   : > { %616 = dma.vmem_to_hbm [thread:$0]  (%p793_p5), %s465_s5, 128, %s882_s8, %s451_s9  }
 0x201 PF: > { %p622_p13 = scmp.ge.s32.totalorder %s724_s18, 2  ;;  %s476_s28 = sand.u32 1, %s712_s15  }
 0x202   : > { %s477_s29 = scalar_lea.sflag [#allocation3], %s476_s28 }
 0x203   : > { %p619_p0 = pnand %p622_p13, %p797_p6 }
 0x205   : > { %p620_p1 = pneg %p619_p0 }
 0x207   : > { %707 = dma.done.wait (%p620_p1), %s477_s29, 128  }
 0x208   : > { %709 = vsyncadd (%p620_p1), %s477_s29, 4294967168  ;;  %p14_p2 = scmp.ge.s32.totalorder %s780_s21, 4   ;;  %s924_s15 = smov %s716_s16 }
 0x209   : > { %s925_s16 = smov %s720_s17  ;;  %s926_s17 = smov %s791_s24 }
 0x20a   : > { %s927_s18 = smov %s780_s21  ;;  %16 = sbr.rel (!%p14_p2) target bundleno = 3 (0x3), region = 71 }
 0x20f   :  { %482 = vsyncpa [#allocation3], 1 }
 0x210   :  { %484 = vsyncpa [#allocation3 + $0x1], 1 }

</bundles_post_ra>
